<compile_context>
chip_gen: v5e
topology: v5e:2x2
jax: 0.10.0
libtpu: 0.0.40
codegen_flags: <defaults>
</compile_context>

<pallas_src>
import jax
import jax.numpy as jnp
from jax.experimental import pallas as pl
from jax.experimental.pallas import tpu as pltpu

# Shapes implied by the module. `features_train.shape[1]` comes from a CSV we don't
# have, so pick a small deterministic value.
IN_FEATURES = 12
HIDDEN_1 = 16
HIDDEN_2 = 8
OUT_FEATURES = 1

BLOCK_BATCH = 2048   # rows per grid step (multiple of 128 -> lane-dense out blocks)
CHUNK_ROWS = 256     # rows per in-kernel chunk (keeps values register-sized)


def _row_chunks(n, size):
    """Static (start, stop) row chunks covering [0, n)."""
    chunks, start = [], 0
    while start < n:
        stop = min(start + size, n)
        chunks.append((start, stop))
        start = stop
    return chunks


def mlp_kernel(x_ref, w1_ref, b1_ref, w2_ref, b2_ref, w3_ref, b3_ref, o_ref):
    """Fused 3-layer MLP on one (TB, IN) batch tile, computed transposed."""
    w1 = w1_ref[...]            # (H1, IN)   PyTorch [out, in] layout
    b1 = b1_ref[...]            # (H1, 1)
    w2 = w2_ref[...]            # (H2, H1)
    b2 = b2_ref[...]            # (H2, 1)
    w3 = w3_ref[...]            # (H2, 1)    fc_out weight as a column
    b3 = b3_ref[...]            # (1, 1)

    tb = x_ref.shape[0]
    for r0, r1 in _row_chunks(tb, CHUNK_ROWS):       # static slices, unrolled
        xc = x_ref[r0:r1, :]                         # (nr, IN) batch on sublanes

        # fc1 as an NT matmul: h1t[j, b] = sum_k w1[j, k] * x[b, k]
        # -> batch lands on the lane axis, hidden dim on sublanes.
        h1t = jax.lax.dot_general(
            w1, xc, (((1,), (1,)), ((), ())),
            preferred_element_type=jnp.float32)      # (H1, nr)
        h1t = jax.nn.sigmoid(h1t + b1)

        # fc2: plain matmul, already lane-dense.
        h2t = jnp.dot(w2, h1t, preferred_element_type=jnp.float32) + b2
        h2t = jax.nn.sigmoid(h2t)                    # (H2, nr)

        # fc_out (K=8, N=1): broadcast-multiply + sublane reduce (keeps it off the MXU).
        yt = jnp.sum(h2t * w3, axis=0, keepdims=True) + b3   # (1, nr)

        o_ref[:, r0:r1] = yt.astype(o_ref.dtype)


def net_forward(x, params, *, block_batch=BLOCK_BATCH):
    """Runs the fused MLP Pallas kernel.

    x: [batch, IN_FEATURES] float32
    params: PyTorch-layout weights: w1 [16,IN], b1 [16], w2 [8,16], b2 [8],
            w3 [1,8], b3 [1].
    Returns [batch, 1] float32 (same semantics as Net.forward).
    """
    batch, in_features = x.shape
    w1 = params["w1"]                                       # (H1, IN)
    b1 = params["b1"].reshape(HIDDEN_1, 1)                  # (H1, 1)
    w2 = params["w2"]                                       # (H2, H1)
    b2 = params["b2"].reshape(HIDDEN_2, 1)                  # (H2, 1)
    w3 = params["w3"].reshape(OUT_FEATURES, HIDDEN_2).T     # (H2, 1) column
    b3 = params["b3"].reshape(1, 1)                         # (1, 1)

    # Tile the batch; small batches run as a single full-array tile.
    tb = block_batch if batch >= block_batch else batch
    num_tiles = pl.cdiv(batch, tb)
    padded = num_tiles * tb
    if padded != batch:
        x = jnp.pad(x, ((0, padded - batch), (0, 0)))

    full = lambda a: pl.BlockSpec(a.shape, lambda i, _a=a: (0,) * _a.ndim)

    weight_bytes = sum(int(a.size) * a.dtype.itemsize
                       for a in (w1, b1, w2, b2, w3, b3))
    cost = pl.CostEstimate(
        flops=2 * padded * (IN_FEATURES * HIDDEN_1
                            + HIDDEN_1 * HIDDEN_2
                            + HIDDEN_2 * OUT_FEATURES),
        transcendentals=padded * (HIDDEN_1 + HIDDEN_2),
        bytes_accessed=padded * (in_features + OUT_FEATURES) * x.dtype.itemsize
        + weight_bytes,
    )

    out = pl.pallas_call(
        mlp_kernel,
        out_shape=jax.ShapeDtypeStruct((1, padded), jnp.float32),
        grid=(num_tiles,),
        in_specs=[
            pl.BlockSpec((tb, in_features), lambda i: (i, 0)),   # x tile
            full(w1), full(b1), full(w2), full(b2), full(w3), full(b3),
        ],
        out_specs=pl.BlockSpec((1, tb), lambda i: (0, i)),       # lane-dense output
        compiler_params=pltpu.CompilerParams(
            dimension_semantics=("parallel",)),                  # megacore on v7x
        cost_estimate=cost,
    )(x, w1, b1, w2, b2, w3, b3)

    return out[0, :batch].reshape(batch, OUT_FEATURES)


def init_params(key):
    """PyTorch nn.Linear-style init (uniform +-1/sqrt(fan_in)), PyTorch [out,in] layout."""
    def linear(key, fan_in, fan_out):
        kw, kb = jax.random.split(key)
        bound = 1.0 / (fan_in ** 0.5)
        w = jax.random.uniform(kw, (fan_out, fan_in), jnp.float32, -bound, bound)
        b = jax.random.uniform(kb, (fan_out,), jnp.float32, -bound, bound)
        return w, b

    k1, k2, k3 = jax.random.split(key, 3)
    w1, b1 = linear(k1, IN_FEATURES, HIDDEN_1)
    w2, b2 = linear(k2, HIDDEN_1, HIDDEN_2)
    w3, b3 = linear(k3, HIDDEN_2, OUT_FEATURES)
    return {"w1": w1, "b1": b1, "w2": w2, "b2": b2, "w3": w3, "b3": b3}


def net_forward_ref(x, p):
    """Pure-JAX reference (PyTorch-layout weights) for correctness checking."""
    h1 = jax.nn.sigmoid(x @ p["w1"].T + p["b1"])
    h2 = jax.nn.sigmoid(h1 @ p["w2"].T + p["b2"])
    return h2 @ p["w3"].T + p["b3"]


if __name__ == "__main__":
    key = jax.random.PRNGKey(0)
    kx, kp = jax.random.split(key)
    params = init_params(kp)

    # Small single-tile case (matches the module's toy usage).
    batch = 8
    x = jax.random.normal(kx, (batch, IN_FEATURES), jnp.float32)
    out = jax.block_until_ready(net_forward(x, params))
    ref = net_forward_ref(x, params)
    assert out.shape == (batch, OUT_FEATURES)
    assert jnp.allclose(out, ref, atol=1e-5, rtol=1e-5), "small-batch mismatch vs reference"

    # Multi-tile case: exercises the pipelined grid, padding and lane-dense stores.
    batch2 = 2100
    x2 = jax.random.normal(jax.random.PRNGKey(1), (batch2, IN_FEATURES), jnp.float32)
    out2 = jax.block_until_ready(net_forward(x2, params))
    ref2 = net_forward_ref(x2, params)
    assert out2.shape == (batch2, OUT_FEATURES)
    assert jnp.allclose(out2, ref2, atol=1e-5, rtol=1e-5), "tiled-batch mismatch vs reference"

    print("KERNEL_OK")
</pallas_src>

<mosaic_0001>
module attributes {stable_mosaic.version = 11 : i64} {
  func.func @mlp_kernel(%arg0: i32, %arg1: memref<8x12xf32, #tpu.memory_space<vmem>>, %arg2: memref<16x12xf32, #tpu.memory_space<vmem>>, %arg3: memref<16x1xf32, #tpu.memory_space<vmem>>, %arg4: memref<8x16xf32, #tpu.memory_space<vmem>>, %arg5: memref<8x1xf32, #tpu.memory_space<vmem>>, %arg6: memref<8x1xf32, #tpu.memory_space<vmem>>, %arg7: memref<1x1xf32, #tpu.memory_space<vmem>>, %arg8: memref<1x8xf32, #tpu.memory_space<vmem>>) attributes {dimension_semantics = [#tpu.dimension_semantics<parallel>], iteration_bounds = array<i64: 1>, scalar_prefetch = 0 : i64, scratch_operands = 0 : i64, tpu.core_type = #tpu.core_type<tc>, window_params = [{transform_indices = @transform_0, window_bounds = array<i64: 8, 12>}, {pipeline_mode = #tpu.pipeline_mode<synchronous>, transform_indices = @transform_1, window_bounds = array<i64: 16, 12>}, {pipeline_mode = #tpu.pipeline_mode<synchronous>, transform_indices = @transform_2, window_bounds = array<i64: 16, 1>}, {pipeline_mode = #tpu.pipeline_mode<synchronous>, transform_indices = @transform_3, window_bounds = array<i64: 8, 16>}, {pipeline_mode = #tpu.pipeline_mode<synchronous>, transform_indices = @transform_4, window_bounds = array<i64: 8, 1>}, {pipeline_mode = #tpu.pipeline_mode<synchronous>, transform_indices = @transform_5, window_bounds = array<i64: 8, 1>}, {pipeline_mode = #tpu.pipeline_mode<synchronous>, transform_indices = @transform_6, window_bounds = array<i64: 1, 1>}, {transform_indices = @transform_7, window_bounds = array<i64: 1, 8>}]} {
    %c0 = arith.constant 0 : index
    %c0_0 = arith.constant 0 : index
    %0 = vector.load %arg2[%c0, %c0_0] : memref<16x12xf32, #tpu.memory_space<vmem>>, vector<16x12xf32>
    %c0_1 = arith.constant 0 : index
    %c0_2 = arith.constant 0 : index
    %1 = vector.load %arg3[%c0_1, %c0_2] : memref<16x1xf32, #tpu.memory_space<vmem>>, vector<16x1xf32>
    %c0_3 = arith.constant 0 : index
    %c0_4 = arith.constant 0 : index
    %2 = vector.load %arg4[%c0_3, %c0_4] : memref<8x16xf32, #tpu.memory_space<vmem>>, vector<8x16xf32>
    %c0_5 = arith.constant 0 : index
    %c0_6 = arith.constant 0 : index
    %3 = vector.load %arg5[%c0_5, %c0_6] : memref<8x1xf32, #tpu.memory_space<vmem>>, vector<8x1xf32>
    %c0_7 = arith.constant 0 : index
    %c0_8 = arith.constant 0 : index
    %4 = vector.load %arg6[%c0_7, %c0_8] : memref<8x1xf32, #tpu.memory_space<vmem>>, vector<8x1xf32>
    %c0_9 = arith.constant 0 : index
    %c0_10 = arith.constant 0 : index
    %5 = vector.load %arg7[%c0_9, %c0_10] : memref<1x1xf32, #tpu.memory_space<vmem>>, vector<1x1xf32>
    %c0_11 = arith.constant 0 : index
    %c0_12 = arith.constant 0 : index
    %6 = vector.load %arg1[%c0_11, %c0_12] : memref<8x12xf32, #tpu.memory_space<vmem>>, vector<8x12xf32>
    %cst = arith.constant dense<0.000000e+00> : vector<16x8xf32>
    %7 = tpu.matmul %0, %6, %cst {dimension_numbers = #tpu.dot_dimension_numbers<[1], [1], [0], [0], [0, 0, 1, 0], [], []>} : vector<16x12xf32>, vector<8x12xf32>, vector<16x8xf32> -> vector<16x8xf32>
    %8 = vector.broadcast %1 : vector<16x1xf32> to vector<16x8xf32>
    %9 = arith.addf %7, %8 : vector<16x8xf32>
    %10 = arith.negf %9 : vector<16x8xf32>
    %11 = math.exp %10 : vector<16x8xf32>
    %cst_13 = arith.constant 1.000000e+00 : f32
    %12 = vector.broadcast %cst_13 : f32 to vector<16x8xf32>
    %13 = arith.addf %12, %11 : vector<16x8xf32>
    %14 = arith.divf %12, %13 : vector<16x8xf32>
    %cst_14 = arith.constant dense<0.000000e+00> : vector<8x8xf32>
    %15 = tpu.matmul %2, %14, %cst_14 {dimension_numbers = #tpu.dot_dimension_numbers<[1], [0], [0], [1], [0, 0, 1, 1], [], []>} : vector<8x16xf32>, vector<16x8xf32>, vector<8x8xf32> -> vector<8x8xf32>
    %16 = vector.broadcast %3 : vector<8x1xf32> to vector<8x8xf32>
    %17 = arith.addf %15, %16 : vector<8x8xf32>
    %18 = arith.negf %17 : vector<8x8xf32>
    %19 = math.exp %18 : vector<8x8xf32>
    %cst_15 = arith.constant 1.000000e+00 : f32
    %20 = vector.broadcast %cst_15 : f32 to vector<8x8xf32>
    %21 = arith.addf %20, %19 : vector<8x8xf32>
    %22 = arith.divf %20, %21 : vector<8x8xf32>
    %23 = vector.broadcast %4 : vector<8x1xf32> to vector<8x8xf32>
    %24 = arith.mulf %22, %23 : vector<8x8xf32>
    %cst_16 = arith.constant dense<0.000000e+00> : vector<8xf32>
    %25 = vector.multi_reduction <add>, %24, %cst_16 [0] : vector<8x8xf32> to vector<8xf32>
    %26 = vector.shape_cast %25 : vector<8xf32> to vector<1x8xf32>
    %27 = vector.broadcast %5 : vector<1x1xf32> to vector<1x8xf32>
    %28 = arith.addf %26, %27 : vector<1x8xf32>
    %c0_17 = arith.constant 0 : index
    %c0_18 = arith.constant 0 : index
    %29 = vector.load %arg8[%c0_17, %c0_18] : memref<1x8xf32, #tpu.memory_space<vmem>>, vector<1x8xf32>
    tpu.vector_store %arg8[%c0_17, %c0_18], %28 {strides = array<i32>} : memref<1x8xf32, #tpu.memory_space<vmem>>, vector<1x8xf32>,
    return
  }
  func.func @transform_0(%arg0: i32) -> (i32, i32) {
    %c0_i32 = arith.constant 0 : i32
    %c0_i32_0 = arith.constant 0 : i32
    return %arg0, %c0_i32 : i32, i32
  }
  func.func @transform_1(%arg0: i32) -> (i32, i32) {
    %c0_i32 = arith.constant 0 : i32
    %c0_i32_0 = arith.constant 0 : i32
    %c0_i32_1 = arith.constant 0 : i32
    return %c0_i32, %c0_i32_0 : i32, i32
  }
  func.func @transform_2(%arg0: i32) -> (i32, i32) {
    %c0_i32 = arith.constant 0 : i32
    %c0_i32_0 = arith.constant 0 : i32
    %c0_i32_1 = arith.constant 0 : i32
    return %c0_i32, %c0_i32_0 : i32, i32
  }
  func.func @transform_3(%arg0: i32) -> (i32, i32) {
    %c0_i32 = arith.constant 0 : i32
    %c0_i32_0 = arith.constant 0 : i32
    %c0_i32_1 = arith.constant 0 : i32
    return %c0_i32, %c0_i32_0 : i32, i32
  }
  func.func @transform_4(%arg0: i32) -> (i32, i32) {
    %c0_i32 = arith.constant 0 : i32
    %c0_i32_0 = arith.constant 0 : i32
    %c0_i32_1 = arith.constant 0 : i32
    return %c0_i32, %c0_i32_0 : i32, i32
  }
  func.func @transform_5(%arg0: i32) -> (i32, i32) {
    %c0_i32 = arith.constant 0 : i32
    %c0_i32_0 = arith.constant 0 : i32
    %c0_i32_1 = arith.constant 0 : i32
    return %c0_i32, %c0_i32_0 : i32, i32
  }
  func.func @transform_6(%arg0: i32) -> (i32, i32) {
    %c0_i32 = arith.constant 0 : i32
    %c0_i32_0 = arith.constant 0 : i32
    %c0_i32_1 = arith.constant 0 : i32
    return %c0_i32, %c0_i32_0 : i32, i32
  }
  func.func @transform_7(%arg0: i32) -> (i32, i32) {
    %c0_i32 = arith.constant 0 : i32
    %c0_i32_0 = arith.constant 0 : i32
    return %c0_i32, %arg0 : i32, i32
  }
}

</mosaic_0001>

<bundles_post_ra>
// kernel: tpu_custom_call.1
= control target key start
LH: loop header
LB: loop body
LE: loop exit
PB: predicated region body
PF: predicated region fallthrough
CT: control target
= control target key end

     0   :  { %s329_s0 = inlined_call_operand.vmem [shape: f32[8,12], index: 0, kind: input, shape index: {}]   ;;  %s330_s1 = inlined_call_operand.vmem [shape: f32[16,12], index: 1, kind: input, shape index: {}]   ;;  %s331_s2 = inlined_call_operand.vmem [shape: f32[16,1], index: 2, kind: input, shape index: {}]   ;;  %s332_s3 = inlined_call_operand.vmem [shape: f32[8,16], index: 3, kind: input, shape index: {}]   ;;  %s333_s4 = inlined_call_operand.vmem [shape: f32[8,1], index: 4, kind: input, shape index: {}]   ;;  %s334_s5 = inlined_call_operand.vmem [shape: f32[8,1], index: 5, kind: input, shape index: {}]   ;;  %s335_s6 = inlined_call_operand.<no memory space> [shape: f32[1,1], index: 6, kind: input, shape index: {}]   ;;  %s336_s7 = inlined_call_operand.hbm [shape: f32[1,8], index: 7, kind: output, shape index: {}]  }
   0x1   :  { %v12_v0 = vstv %s335_s6 }
   0x2   :  { %13 = vst [vmem:[#allocation2] sm:$0x1] %v12_v0 }
   0x3   :  { %v37_v1 = vld [vmem:[%s329_s0] sm:$0xff]  ;;  %vm48_vm0 = vcmask 97280   ;;  %v30_v3 = vld [vmem:[%s330_s1 + $0x8] sm:$0xff] }
   0x4   :  { %v29_v2 = vld [vmem:[%s330_s1] sm:$0xff]  ;;  %206 = vmatpush.xpose.msk.msra.mxu0 %vm48_vm0, %v37_v1  ;;  %213 = vmatpush.xpose.msk.msra.mxu2 %vm48_vm0, %v37_v1  ;;  %v32_v4 = vld [vmem:[%s331_s2 + $0x8] sm:$0xff] }
   0x5   :  { %14 = vsyncpa [#allocation4], 0  ;;  %v257_v5 = vmov 0   ;;  %v31_v6 = vld [vmem:[%s331_s2] sm:$0xff]  ;;  %vm124_vm9 = vcmask 130048   ;;  %vm173_vm14 = vcmask 64512  }
   0x6   :  { %216 = vset.pattern.permute.xlu0 %v257_v5  ;;  %217 = vset.pattern.permute.xlu1 %v257_v5  ;;  %v34_v14 = vld [vmem:[%s333_s4] sm:$0xff]  ;;  %s197_s16 = sshll.u32 %s336_s7, 4  ;;  %vm188_vm15 = vcmask 57344   ;;  %s198_s16 = int_to_ptr.hbm [resolvable:$true] %s197_s16 }
   0x7   :  { %45 = vperm.xlu0 %216, %v32_v4   ;;  %218 = vset.pattern.permute.xlu2 %v257_v5  ;;  %v35_v19 = vld [vmem:[%s334_s5] sm:$0xff] }
   0x8   :  { %207 = vmatmul.msk.f32.vlgmr.msra.gmra.mxu0 %vm48_vm0, %v29_v2  ;;  %208 = vmatmul.msk.f32.vlgmr.msra.gmra.mxu2 %vm48_vm0, %v30_v3  ;;  %v33_v41 = vld [vmem:[%s332_s3] sm:$0xff]  ;;  %s258_s3 = smov [#allocation3]  }
   0x9   :  { %v36_v15 = vld [vmem:[#allocation2] sm:$0x1]  ;;  %121 = vperm.xlu1 %217, %v34_v14   ;;  %s195_s13 = sshll.u32 %s258_s3, 4  ;;  %s196_s13 = int_to_ptr.vmem [resolvable:$true] %s195_s13 }
   0xa   :  { %183 = vperm.xlu2 %218, %v36_v15  }
   0xf   :  { %40 = vperm.xlu0 %216, %v31_v6  }
  0x11   :  { %169 = vperm.xlu1 %217, %v35_v19  }
  0x64   :  { %v184_v1 = vpop.permute.xlu2 %183 }
  0x65   :  { %v186_v4 = vperm.slane %v184_v1, 0 }
  0x79   :  { %v46_v7 = vpop.permute.xlu0 %45 }
  0x7b   :  { %v122_v43 = vpop.permute.xlu1 %121 }
  0x81   :  { %v41_v8 = vpop.permute.xlu0 %40 }
  0x83   :  { %v170_v58 = vpop.permute.xlu1 %169 }
  0x85   :  { %v75_v9 = vpop.f32.mrf.mxu0 }
  0x86   :  { %v76_v10 = vadd.f32 %v75_v9, %v41_v8 }
  0x88   :  { %v209_v11 = vmul.f32 -1.442695, %v76_v10 }
  0x8a   :  { %219 = vpow2.f32 %v209_v11 }
  0x8b   :  { %v78_v12 = vpop.f32.mrf.mxu2 }
  0x8c   :  { %v79_v13 = vadd.f32 %v78_v12, %v46_v7 }
  0x8e   :  { %v210_v16 = vmul.f32 -1.442695, %v79_v13 }
  0x90   :  { %v220_v17 = vpop.eup %219  ;;  %221 = vpow2.f32 %v210_v16 }
  0x91   :  { %v87_v18 = vadd.f32 1.0, %v220_v17 }
  0x93   :  { %223 = vrcp.f32 %v87_v18  ;;  %vm94_vm3 = vweird.f32 %v87_v18  ;;  %v100_v33 = vand.u32 2147483648, %v87_v18  ;;  %v98_v35 = vand.u32 2147483647, %v87_v18 }
  0x95   :  { %v101_v40 = vor.u32 1.1754944e-38, %v100_v33  ;;  %vm99_vm8 = vcmp.eq.f32.partialorder %v98_v35, 8.507059e+37 }
  0x96   :  { %v222_v20 = vpop.eup %221 }
  0x97   :  { %v88_v21 = vadd.f32 1.0, %v222_v20 }
  0x99   :  { %v224_v22 = vpop.eup %223  ;;  %225 = vrcp.f32 %v88_v21  ;;  %v115_v29 = vand.u32 2147483648, %v88_v21  ;;  %v113_v31 = vand.u32 2147483647, %v88_v21  ;;  %vm109_vm4 = vweird.f32 %v88_v21 }
  0x9a   :  { %v90_v23 = vmul.f32 %v224_v22, %v87_v18  ;;  %vm95_vm1 = vweird.f32 %v224_v22 }
  0x9b   :  { %vm96_vm5 = vmor %vm94_vm3, %vm95_vm1  ;;  %v116_v36 = vor.u32 1.1754944e-38, %v115_v29  ;;  %vm114_vm7 = vcmp.eq.f32.partialorder %v113_v31, 8.507059e+37 }
  0x9c   :  { %v91_v24 = vsub.f32 1.0, %v90_v23 }
  0x9e   :  { %v92_v27 = vmul.f32 %v224_v22, %v91_v24 }
  0x9f   :  { %v226_v25 = vpop.eup %225 }
  0xa0   :  { %v105_v26 = vmul.f32 %v226_v25, %v88_v21  ;;  %vm110_vm2 = vweird.f32 %v226_v25  ;;  %v93_v32 = vadd.f32 %v224_v22, %v92_v27 }
  0xa1   :  { %vm111_vm6 = vmor %vm109_vm4, %vm110_vm2 }
  0xa2   :  { %v106_v28 = vsub.f32 1.0, %v105_v26  ;;  %v97_v38 = vsel %vm96_vm5, %v224_v22, %v93_v32 }
  0xa3   :  { %v102_v42 = vsel %vm99_vm8, %v101_v40, %v97_v38 }
  0xa4   :  { %v107_v30 = vmul.f32 %v226_v25, %v106_v28 }
  0xa6   :  { %v108_v34 = vadd.f32 %v226_v25, %v107_v30 }
  0xa8   :  { %v112_v37 = vsel %vm111_vm6, %v226_v25, %v108_v34 }
  0xa9   :  { %v117_v39 = vsel %vm114_vm7, %v116_v36, %v112_v37 }
  0xaa   :  { %142 = vmatpush.msra.mxu1 %v117_v39 }
  0xac   :  { %143 = vmatpush.msra.mxu1 %v102_v42 }
  0xad   :  { %211 = vmatmul.msk.f32.vlgmr.msra.gmra.mxu1 %vm124_vm9, %v33_v41 }
 0x12a   :  { %v145_v44 = vpop.f32.mrf.mxu1 }
 0x12b   :  { %v146_v45 = vadd.f32 %v145_v44, %v122_v43 }
 0x12d   :  { %v212_v46 = vmul.f32 -1.442695, %v146_v45 }
 0x12f   :  { %227 = vpow2.f32 %v212_v46 }
 0x135   :  { %v228_v47 = vpop.eup %227 }
 0x136   :  { %v151_v48 = vadd.f32 1.0, %v228_v47 }
 0x138   :  { %229 = vrcp.f32 %v151_v48  ;;  %v163_v52 = vand.u32 2147483648, %v151_v48  ;;  %v161_v54 = vand.u32 2147483647, %v151_v48  ;;  %vm157_vm11 = vweird.f32 %v151_v48 }
 0x13a   :  { %v164_v56 = vor.u32 1.1754944e-38, %v163_v52  ;;  %vm162_vm13 = vcmp.eq.f32.partialorder %v161_v54, 8.507059e+37 }
 0x13e   :  { %v230_v49 = vpop.eup %229 }
 0x13f   :  { %v153_v50 = vmul.f32 %v230_v49, %v151_v48  ;;  %vm158_vm10 = vweird.f32 %v230_v49 }
 0x140   :  { %vm159_vm12 = vmor %vm157_vm11, %vm158_vm10 }
 0x141   :  { %v154_v51 = vsub.f32 1.0, %v153_v50 }
 0x143   :  { %v155_v53 = vmul.f32 %v230_v49, %v154_v51 }
 0x145   :  { %v156_v55 = vadd.f32 %v230_v49, %v155_v53 }
 0x147   :  { %v160_v57 = vsel %vm159_vm12, %v230_v49, %v156_v55 }
 0x148   :  { %v165_v59 = vsel %vm162_vm13, %v164_v56, %v160_v57 }
 0x149   :  { %v172_v60 = vmul.f32 %v170_v58, %v165_v59 }
 0x14b   :  { %v174_v61 = vsel %vm173_vm14, %v172_v60, 0.0 }
 0x14c   :  { %v175_v62 = vrot.slane %v174_v61, 4 }
 0x14e   :  { %v176_v63 = vadd.f32 %v175_v62, %v174_v61 }
 0x150   :  { %v177_v0 = vrot.slane %v176_v63, 2 }
 0x152   :  { %v178_v2 = vadd.f32 %v177_v0, %v176_v63 }
 0x154   :  { %v179_v3 = vrot.slane %v178_v2, 1 }
 0x156   :  { %v180_v5 = vadd.f32 %v179_v3, %v178_v2 }
 0x158   :  { %v187_v6 = vadd.f32 %v186_v4, %v180_v5 }
 0x15a   :  { %189 = vst.msk [vmem:[#allocation3] sm:$0x1] %vm188_vm15, %v187_v6 }
 0x15b   :  { %200 = dma.vmem_to_hbm [thread:$0]  %s196_s13, 16, %s198_s16, [#allocation4]  }
 0x15c   :  { %255 = dma.done.wait [#allocation4], 16  }
 0x15d   :  { %256 = vsyncadd [#allocation4], 4294967280 }
 0x15e   :  { %205 = vsyncpa [#allocation4], 1 }

</bundles_post_ra>
